<compile_context>
chip_gen: v7x
topology: tpu7x:2x2x1
jax: 0.10.0
libtpu: 0.0.40
codegen_flags: <defaults>
</compile_context>

<pallas_src>
import jax
import jax.numpy as jnp
from jax.experimental import pallas as pl
from jax.experimental.pallas import tpu as pltpu


# ---------------------------------------------------------------------------
# Kernels
# ---------------------------------------------------------------------------

def _make_conv_stats_kernel(fuse_relu):
    """Pass 1: y_tile = W^T @ P^T  (+ accumulate per-channel sum / sumsq)."""

    def kernel(wt_ref, pt_ref, y_ref, sum_ref, sq_ref):
        # wt_ref : (Cp, Kc)   transposed, Cout-padded weight (resident, DMA'd once)
        # pt_ref : (Kc, TM)   transposed im2col patch tile (lane-dense in M)
        # y_ref  : (Cp, TM)   conv output tile (lane-dense in M)
        # sum_ref/sq_ref : (Cp, 1) resident accumulators across the grid
        i = pl.program_id(0)
        y = jnp.dot(wt_ref[...], pt_ref[...],
                    preferred_element_type=jnp.float32)          # (Cp, TM) on MXU

        @pl.when(i == 0)
        def _init():
            sum_ref[...] = jnp.zeros_like(sum_ref)
            sq_ref[...] = jnp.zeros_like(sq_ref)

        # Cross-lane reductions go to the XLU -> overlap with MXU work.
        sum_ref[...] = sum_ref[...] + jnp.sum(y, axis=1, keepdims=True)
        sq_ref[...] = sq_ref[...] + jnp.sum(y * y, axis=1, keepdims=True)

        if fuse_relu:                      # only when bn=False (no second pass)
            y = jnp.maximum(y, 0.0)
        y_ref[...] = y.astype(y_ref.dtype)

    return kernel


def _make_bn_relu_kernel(use_relu):
    """Pass 2: lane-dense affine normalize (+ ReLU)."""

    def kernel(scale_ref, shift_ref, y_ref, o_ref):
        # scale/shift : (Cp, 1) broadcast over the lane (M) axis
        v = y_ref[...] * scale_ref[...] + shift_ref[...]
        if use_relu:
            v = jnp.maximum(v, 0.0)
        o_ref[...] = v.astype(o_ref.dtype)

    return kernel


# ---------------------------------------------------------------------------
# Wrapper
# ---------------------------------------------------------------------------

def _round_up(x, m):
    return (x + m - 1) // m * m


def _vmem_limit(block_bytes):
    need = 2 * block_bytes + (2 << 20)           # x2 for double-buffering + slack
    return int(min(max(need, 4 << 20), 100 << 20))


def basic_conv(x_nchw, weight_oihw, gamma=None, beta=None, *, stride=1,
               padding=0, dilation=1, groups=1, relu=True, bn=True,
               eps=1e-5, tile_m=512):
    """Pallas implementation of BasicConv.forward (bias=False, groups=1).

    x_nchw:      (N, Cin, H, W)
    weight_oihw: (Cout, Cin, KH, KW)
    gamma, beta: (Cout,) BatchNorm affine parameters (ignored if bn=False)
    returns:     (N, Cout, Ho, Wo)
    """
    assert groups == 1, "groups > 1 not implemented"
    assert tile_m % 128 == 0, "tile_m must be a multiple of 128"

    N, Cin, H, W = x_nchw.shape
    Cout, Cin_w, KH, KW = weight_oihw.shape
    assert Cin_w == Cin

    # --- layout glue (XLA, outside the hot kernel) --------------------------
    x = jnp.transpose(x_nchw, (0, 2, 3, 1)).astype(jnp.float32)   # NHWC
    x = jnp.pad(x, ((0, 0), (padding, padding), (padding, padding), (0, 0)))
    _, Hp, Wp, _ = x.shape
    Ho = (Hp - dilation * (KH - 1) - 1) // stride + 1
    Wo = (Wp - dilation * (KW - 1) - 1) // stride + 1
    M = N * Ho * Wo
    Kc = KH * KW * Cin

    # im2col built directly transposed -> (Kc, M): lane axis is the big M axis.
    taps = []
    for kh in range(KH):
        for kw in range(KW):
            h0 = kh * dilation
            w0 = kw * dilation
            p = x[:, h0:h0 + stride * (Ho - 1) + 1:stride,
                  w0:w0 + stride * (Wo - 1) + 1:stride, :]        # (N,Ho,Wo,Cin)
            taps.append(jnp.transpose(p, (3, 0, 1, 2)).reshape(Cin, M))
    pt = jnp.concatenate(taps, axis=0)                            # (Kc, M)

    # Pad M up to a multiple of the tile: zero columns -> zero conv output,
    # contributes nothing to sum/sumsq; stats divide by the true M below.
    tm = min(tile_m, _round_up(M, 128))
    Mp = _round_up(M, tm)
    if Mp != M:
        pt = jnp.pad(pt, ((0, 0), (0, Mp - M)))
    grid = (Mp // tm,)

    # weight OIHW -> (Cout, Kc) with tap ordering matching `taps`; pad Cout to /8
    # so the output sublane dim is vreg-aligned.
    Cp = _round_up(Cout, 8)
    wt = jnp.transpose(weight_oihw, (0, 2, 3, 1)).reshape(Cout, Kc)
    wt = wt.astype(jnp.float32)
    if Cp != Cout:
        wt = jnp.pad(wt, ((0, Cp - Cout), (0, 0)))

    fuse_relu = relu and not bn

    # --- pass 1: conv (single K=Kc matmul per tile) + batch-stat accumulation
    blk1_bytes = 4 * (Cp * Kc + Kc * tm + Cp * tm + 2 * Cp)
    y, s_sum, s_sq = pl.pallas_call(
        _make_conv_stats_kernel(fuse_relu),
        grid_spec=pltpu.PrefetchScalarGridSpec(
            num_scalar_prefetch=0,
            grid=grid,
            in_specs=[
                pl.BlockSpec((Cp, Kc), lambda i: (0, 0)),    # weight, resident
                pl.BlockSpec((Kc, tm), lambda i: (0, i)),    # patch tile
            ],
            out_specs=(
                pl.BlockSpec((Cp, tm), lambda i: (0, i)),    # conv out tile
                pl.BlockSpec((Cp, 1), lambda i: (0, 0)),     # sum   (resident)
                pl.BlockSpec((Cp, 1), lambda i: (0, 0)),     # sumsq (resident)
            ),
        ),
        out_shape=(
            jax.ShapeDtypeStruct((Cp, Mp), jnp.float32),
            jax.ShapeDtypeStruct((Cp, 1), jnp.float32),
            jax.ShapeDtypeStruct((Cp, 1), jnp.float32),
        ),
        compiler_params=pltpu.CompilerParams(
            dimension_semantics=("arbitrary",),              # stats accumulate
            vmem_limit_bytes=_vmem_limit(blk1_bytes),
        ),
    )(wt, pt)

    # --- pass 2: BatchNorm (training-mode batch stats) + ReLU ---------------
    if bn:
        if gamma is None:
            gamma = jnp.ones((Cout,), jnp.float32)
        if beta is None:
            beta = jnp.zeros((Cout,), jnp.float32)
        gamma_p = jnp.pad(gamma.astype(jnp.float32), (0, Cp - Cout),
                          constant_values=1.0).reshape(Cp, 1)
        beta_p = jnp.pad(beta.astype(jnp.float32), (0, Cp - Cout)).reshape(Cp, 1)

        cnt = jnp.float32(M)                                 # TRUE count, not Mp
        mean = s_sum / cnt                                   # (Cp, 1)
        var = jnp.maximum(s_sq / cnt - mean * mean, 0.0)     # clamp: no NaN
        inv = jax.lax.rsqrt(var + jnp.float32(eps))
        scale = gamma_p * inv
        shift = beta_p - mean * scale

        blk2_bytes = 4 * (2 * Cp + 2 * Cp * tm)
        y = pl.pallas_call(
            _make_bn_relu_kernel(relu),
            grid_spec=pltpu.PrefetchScalarGridSpec(
                num_scalar_prefetch=0,
                grid=grid,
                in_specs=[
                    pl.BlockSpec((Cp, 1), lambda i: (0, 0)),   # scale, resident
                    pl.BlockSpec((Cp, 1), lambda i: (0, 0)),   # shift, resident
                    pl.BlockSpec((Cp, tm), lambda i: (0, i)),
                ],
                out_specs=pl.BlockSpec((Cp, tm), lambda i: (0, i)),
            ),
            out_shape=jax.ShapeDtypeStruct((Cp, Mp), jnp.float32),
            compiler_params=pltpu.CompilerParams(
                dimension_semantics=("parallel",),
                vmem_limit_bytes=_vmem_limit(blk2_bytes),
            ),
        )(scale, shift, y)

    # --- layout glue back to NCHW -------------------------------------------
    out = y[:Cout, :M].reshape(Cout, N, Ho, Wo)
    return jnp.transpose(out, (1, 0, 2, 3)).astype(x_nchw.dtype)


# ---------------------------------------------------------------------------
# Pure-JAX reference (PyTorch semantics: conv + training-mode BN + ReLU)
# ---------------------------------------------------------------------------

def _reference(x_nchw, weight_oihw, gamma, beta, *, stride=1, padding=0,
               dilation=1, relu=True, bn=True, eps=1e-5):
    y = jax.lax.conv_general_dilated(
        x_nchw, weight_oihw, window_strides=(stride, stride),
        padding=((padding, padding), (padding, padding)),
        rhs_dilation=(dilation, dilation),
        dimension_numbers=("NCHW", "OIHW", "NCHW"))
    if bn:
        mean = jnp.mean(y, axis=(0, 2, 3), keepdims=True)
        var = jnp.mean((y - mean) ** 2, axis=(0, 2, 3), keepdims=True)
        y = (y - mean) * jax.lax.rsqrt(var + eps)
        y = y * gamma.reshape(1, -1, 1, 1) + beta.reshape(1, -1, 1, 1)
    if relu:
        y = jnp.maximum(y, 0.0)
    return y


if __name__ == "__main__":
    # BasicConv(in_planes=4, out_planes=8, kernel_size=3, stride=1, padding=1)
    N, Cin, H, W = 2, 4, 16, 16
    Cout, KH, KW = 8, 3, 3
    padding = 1

    key = jax.random.PRNGKey(0)
    kx, kw = jax.random.split(key)
    x = jax.random.normal(kx, (N, Cin, H, W), dtype=jnp.float32)
    weight = jax.random.normal(kw, (Cout, Cin, KH, KW), dtype=jnp.float32) * 0.1
    gamma = jnp.ones((Cout,), jnp.float32)    # BatchNorm2d affine init
    beta = jnp.zeros((Cout,), jnp.float32)

    # tile_m=256 -> M=512 is processed as a 2-step pipelined grid.
    out = basic_conv(x, weight, gamma, beta, stride=1, padding=padding,
                     relu=True, bn=True, tile_m=256)
    out = jax.block_until_ready(out)

    ref = _reference(x, weight, gamma, beta, stride=1, padding=padding,
                     relu=True, bn=True)
    assert out.shape == (N, Cout, H, W)
    assert jnp.allclose(out, ref, rtol=1e-4, atol=1e-4), "mismatch vs reference"

    print("KERNEL_OK")
</pallas_src>

<mosaic_0001>
module attributes {stable_mosaic.version = 11 : i64} {
  func.func @kernel(%arg0: i32, %arg1: memref<8x36xf32, #tpu.memory_space<vmem>>, %arg2: memref<36x256xf32, #tpu.memory_space<vmem>>, %arg3: memref<8x256xf32, #tpu.memory_space<vmem>>, %arg4: memref<8x1xf32, #tpu.memory_space<vmem>>, %arg5: memref<8x1xf32, #tpu.memory_space<vmem>>) attributes {dimension_semantics = [#tpu.dimension_semantics<arbitrary>], iteration_bounds = array<i64: 2>, scalar_prefetch = 0 : i64, scratch_operands = 0 : i64, tpu.core_type = #tpu.core_type<tc>, window_params = [{pipeline_mode = #tpu.pipeline_mode<synchronous>, transform_indices = @transform_0, window_bounds = array<i64: 8, 36>}, {transform_indices = @transform_1, window_bounds = array<i64: 36, 256>}, {transform_indices = @transform_2, window_bounds = array<i64: 8, 256>}, {pipeline_mode = #tpu.pipeline_mode<synchronous>, transform_indices = @transform_3, window_bounds = array<i64: 8, 1>}, {pipeline_mode = #tpu.pipeline_mode<synchronous>, transform_indices = @transform_4, window_bounds = array<i64: 8, 1>}]} {
    %c0 = arith.constant 0 : index
    %c0_0 = arith.constant 0 : index
    %0 = vector.load %arg1[%c0, %c0_0] : memref<8x36xf32, #tpu.memory_space<vmem>>, vector<8x36xf32>
    %c0_1 = arith.constant 0 : index
    %c0_2 = arith.constant 0 : index
    %1 = vector.load %arg2[%c0_1, %c0_2] : memref<36x256xf32, #tpu.memory_space<vmem>>, vector<36x256xf32>
    %cst = arith.constant dense<0.000000e+00> : vector<8x256xf32>
    %2 = tpu.matmul %0, %1, %cst {dimension_numbers = #tpu.dot_dimension_numbers<[1], [0], [0], [1], [0, 0, 1, 1], [], []>} : vector<8x36xf32>, vector<36x256xf32>, vector<8x256xf32> -> vector<8x256xf32>
    %c0_i32 = arith.constant 0 : i32
    %3 = arith.cmpi eq, %arg0, %c0_i32 : i32
    %4 = arith.extui %3 : i1 to i32
    %c0_i32_3 = arith.constant 0 : i32
    %5 = arith.cmpi ne, %4, %c0_i32_3 : i32
    scf.if %5 {
      %cst_16 = arith.constant 0.000000e+00 : f32
      %18 = vector.broadcast %cst_16 : f32 to vector<8x1xf32>
      %c0_17 = arith.constant 0 : index
      %c0_18 = arith.constant 0 : index
      %19 = vector.load %arg4[%c0_17, %c0_18] : memref<8x1xf32, #tpu.memory_space<vmem>>, vector<8x1xf32>
      tpu.vector_store %arg4[%c0_17, %c0_18], %18 {strides = array<i32>} : memref<8x1xf32, #tpu.memory_space<vmem>>, vector<8x1xf32>,
      %cst_19 = arith.constant 0.000000e+00 : f32
      %20 = vector.broadcast %cst_19 : f32 to vector<8x1xf32>
      %c0_20 = arith.constant 0 : index
      %c0_21 = arith.constant 0 : index
      %21 = vector.load %arg5[%c0_20, %c0_21] : memref<8x1xf32, #tpu.memory_space<vmem>>, vector<8x1xf32>
      tpu.vector_store %arg5[%c0_20, %c0_21], %20 {strides = array<i32>} : memref<8x1xf32, #tpu.memory_space<vmem>>, vector<8x1xf32>,
    } else {
    }
    %c0_4 = arith.constant 0 : index
    %c0_5 = arith.constant 0 : index
    %6 = vector.load %arg4[%c0_4, %c0_5] : memref<8x1xf32, #tpu.memory_space<vmem>>, vector<8x1xf32>
    %cst_6 = arith.constant dense<0.000000e+00> : vector<8xf32>
    %7 = vector.multi_reduction <add>, %2, %cst_6 [1] : vector<8x256xf32> to vector<8xf32>
    %8 = vector.shape_cast %7 : vector<8xf32> to vector<8x1xf32>
    %9 = arith.addf %6, %8 : vector<8x1xf32>
    %c0_7 = arith.constant 0 : index
    %c0_8 = arith.constant 0 : index
    %10 = vector.load %arg4[%c0_7, %c0_8] : memref<8x1xf32, #tpu.memory_space<vmem>>, vector<8x1xf32>
    tpu.vector_store %arg4[%c0_7, %c0_8], %9 {strides = array<i32>} : memref<8x1xf32, #tpu.memory_space<vmem>>, vector<8x1xf32>,
    %c0_9 = arith.constant 0 : index
    %c0_10 = arith.constant 0 : index
    %11 = vector.load %arg5[%c0_9, %c0_10] : memref<8x1xf32, #tpu.memory_space<vmem>>, vector<8x1xf32>
    %12 = arith.mulf %2, %2 : vector<8x256xf32>
    %cst_11 = arith.constant dense<0.000000e+00> : vector<8xf32>
    %13 = vector.multi_reduction <add>, %12, %cst_11 [1] : vector<8x256xf32> to vector<8xf32>
    %14 = vector.shape_cast %13 : vector<8xf32> to vector<8x1xf32>
    %15 = arith.addf %11, %14 : vector<8x1xf32>
    %c0_12 = arith.constant 0 : index
    %c0_13 = arith.constant 0 : index
    %16 = vector.load %arg5[%c0_12, %c0_13] : memref<8x1xf32, #tpu.memory_space<vmem>>, vector<8x1xf32>
    tpu.vector_store %arg5[%c0_12, %c0_13], %15 {strides = array<i32>} : memref<8x1xf32, #tpu.memory_space<vmem>>, vector<8x1xf32>,
    %c0_14 = arith.constant 0 : index
    %c0_15 = arith.constant 0 : index
    %17 = vector.load %arg3[%c0_14, %c0_15] : memref<8x256xf32, #tpu.memory_space<vmem>>, vector<8x256xf32>
    tpu.vector_store %arg3[%c0_14, %c0_15], %2 {strides = array<i32>} : memref<8x256xf32, #tpu.memory_space<vmem>>, vector<8x256xf32>,
    return
  }
  func.func @transform_0(%arg0: i32) -> (i32, i32) {
    %c0_i32 = arith.constant 0 : i32
    %c0_i32_0 = arith.constant 0 : i32
    %c0_i32_1 = arith.constant 0 : i32
    return %c0_i32, %c0_i32_0 : i32, i32
  }
  func.func @transform_1(%arg0: i32) -> (i32, i32) {
    %c0_i32 = arith.constant 0 : i32
    %c0_i32_0 = arith.constant 0 : i32
    return %c0_i32, %arg0 : i32, i32
  }
  func.func @transform_2(%arg0: i32) -> (i32, i32) {
    %c0_i32 = arith.constant 0 : i32
    %c0_i32_0 = arith.constant 0 : i32
    return %c0_i32, %arg0 : i32, i32
  }
  func.func @transform_3(%arg0: i32) -> (i32, i32) {
    %c0_i32 = arith.constant 0 : i32
    %c0_i32_0 = arith.constant 0 : i32
    %c0_i32_1 = arith.constant 0 : i32
    return %c0_i32, %c0_i32_0 : i32, i32
  }
  func.func @transform_4(%arg0: i32) -> (i32, i32) {
    %c0_i32 = arith.constant 0 : i32
    %c0_i32_0 = arith.constant 0 : i32
    %c0_i32_1 = arith.constant 0 : i32
    return %c0_i32, %c0_i32_0 : i32, i32
  }
}

</mosaic_0001>

<bundles_post_ra>
// kernel: tpu_custom_call.1
= control target key start
LH: loop header
LB: loop body
LE: loop exit
PB: predicated region body
PF: predicated region fallthrough
CT: control target
= control target key end

     0   :  { %10 = vsyncpa [#allocation3], 0  ;;  %s919_s0 = inlined_call_operand.hbm [shape: f32[8,36], index: 0, kind: input, shape index: {}]   ;;  %s920_s1 = inlined_call_operand.hbm [shape: f32[36,512], index: 1, kind: input, shape index: {}]   ;;  %s921_s2 = inlined_call_operand.hbm [shape: f32[8,512], index: 2, kind: output, shape index: {0}]   ;;  %s922_s3 = inlined_call_operand.vmem [shape: f32[8,1], index: 3, kind: output, shape index: {1}]   ;;  %s923_s4 = inlined_call_operand.vmem [shape: f32[8,1], index: 4, kind: output, shape index: {2}]  }
   0x1   :  { %11 = vsyncpa [#allocation6], 0 }
   0x2   :  { %13 = vsyncpa [#allocation6 + $0x1], 0 }
   0x3   :  { %14 = vsyncpa [#allocation4], 0 }
   0x4   :  { %16 = vsyncpa [#allocation4 + $0x1], 0  ;;  %s707_s15 = smov 0   ;;  %s709_s16 = smov 0  }
   0x5   :  { %s711_s17 = smov 0   ;;  %s713_s18 = smov 0  }
   0x6 LB: > { %s728_s19 = sadd.s32 4294967295, %s672_s18   ;;  %s452_s20 = sadd.s32 4294967294, %s672_s18   ;;  %s672_s18 = sphi %s713_s18, %s949_s18   ;;  %s668_s17 = sphi %s711_s17, %s948_s17   ;;  %s664_s16 = sphi %s709_s16, %s947_s16   ;;  %s660_s15 = sphi %s707_s15, %s946_s15  }
   0x7   : > { %s732_s21 = sadd.s32 1, %s672_s18   ;;  %s50_s22 = sadd.s32 1, %s668_s17 }
   0x8   : > { %s47_s23 = ssub.s32 %s672_s18, %s732_s21  ;;  %p57_p0 = scmp.ne.s32.totalorder %s668_s17, %s664_s16 }
   0x9   : > { %p48_p1 = scmp.eq.s32.totalorder %s47_s23, 0  ;;  %p58_p2 = scmp.eq.s32.totalorder %s672_s18, 0 }
   0xa   : > { %p63_p3 = scmp.ne.s32.totalorder %s664_s16, %s660_s15  ;;  %p924_p4 = scmp.eq.s32.totalorder %s728_s19, 0 }
   0xb   : > { %s744_s24 = scalar_select %p48_p1, %s668_s17, %s50_s22  }
   0xc   : > { %p746_p5 = por %p58_p2, %p57_p0  ;;  %p752_p6 = por %p924_p4, %p63_p3 }
   0xd   : > { %p87_p7 = scmp.eq.s32.totalorder %s728_s19, 1  ;;  %p93_p8 = scmp.eq.s32.totalorder %s452_s20, 1 }
   0xe   : > { %s930_s26 = scalar_select %p752_p6, 1, 0 }
   0xf   : > { %p453_p9 = scmp.ge.s32.totalorder %s672_s18, 1  ;;  %p142_p10 = scmp.lt.s32.totalorder %s672_s18, 3 }
  0x10   : > { %p759_p11 = por %p87_p7, %p57_p0  ;;  %p763_p12 = por %p93_p8, %p63_p3 }
  0x11   : > { %p767_p13 = pnand %p453_p9, %p142_p10  ;;  %s674_s30 = smov [#allocation2]  }
  0x12   : > { %s931_s27 = scalar_select %p759_p11, 1, 0 }
  0x13   : > { %s932_s28 = scalar_select %p763_p12, 1, 0 }
  0x14   : > { %s933_s29 = scalar_select %p767_p13, 1, 0 }
  0x15   : > { %p490_p4 = pneg %p767_p13  ;;  %s155_s5 = sshll.u32 %s674_s30, 4  ;;  %s156_s5 = int_to_ptr.vmem [resolvable:$true] %s155_s5 }
  0x16   : > { %p503_p0 = scmp.lt.s32.totalorder %s672_s18, 2  ;;  %p934_p7 = scmp.eq.s32.totalorder %s728_s19, 0 }
  0x17   : > { %s166_s7 = sand.u32 1, %s668_s17   ;;  %s544_s12 = scalar_lea.hbm %s919_s0, 128 }
  0x18   : > { %p778_p6 = pnand %p490_p4, %p934_p7  ;;  %p785_p3 = pnand %p503_p0, %p746_p5 }
  0x19   : > { %s480_s9 = smul.u32 80, %s166_s7  ;;  %p545_p8 = scmp.ne.s32.totalorder %s919_s0, %s544_s12 }
  0x1a   : > { %s936_s8 = scalar_select %p785_p3, 1, 0 }
  0x1b   : > { %p546_p4 = pneg %p778_p6  ;;  %p551_p5 = scmp.lt.u32.totalorder %s544_s12, %s919_s0 }
  0x1d   : > { %p547_p9 = pnand %p546_p4, %p545_p8 }
  0x1f   : > { %p548_p10 = pneg %p547_p9 }
  0x21   : > { %p553_p0 = pnand %p551_p5, %p548_p10 }
  0x23   : > { %556 = shalt.err (!%p553_p0)
}
  0x24   : > { %s557_s23 = scalar_lea.vmem %s156_s5, 128  ;;  %p565_p12 = scmp.lt.s32.totalorder %s156_s5, %s156_s5 }
  0x25   : > { %p558_p7 = scmp.ne.s32.totalorder %s156_s5, %s557_s23  ;;  %p566_p11 = scmp.lt.s32.totalorder %s557_s23, %s557_s23 }
  0x27   : > { %p560_p2 = pnand %p558_p7, %p546_p4  ;;  %p567_p13 = por %p566_p11, %p565_p12 }
  0x29   : > { %p561_p1 = pneg %p560_p2 }
  0x2b   : > { %p568_p3 = pnand %p567_p13, %p561_p1 }
  0x2d   : > { %571 = shalt.err (!%p568_p3)
}
  0x2e   : > { %493 = dma.hbm_to_vmem [thread:$0]  (!%p778_p6), %s919_s0, 128, %s156_s5, [#allocation3]  }
  0x2f   : > { %s470_s10 = sshll.u32 %s672_s18, 8  ;;  %s170_s11 = scalar_lea.vmem [#allocation5], %s480_s9 }
  0x30   : > { %s177_s12 = sshll.u32 %s170_s11, 4  ;;  %s809_s20 = scalar_lea.hbm %s920_s1, %s470_s10  ;;  %s811_s12 = int_to_ptr.vmem [resolvable:$true] %s177_s12 }
  0x31   : > { %s813_s6 = scalar_lea.sflag [#allocation6], %s166_s7  ;;  %s572_s22 = scalar_lea.hbm %s809_s20, 1280 }
  0x32   : > { %p573_p11 = scmp.ne.s32.totalorder %s809_s20, %s572_s22  ;;  %p937_p12 = scmp.ne.s32.totalorder %s936_s8, 0 }
  0x33   : > { %s577_s23 = scalar_lea.hbm %s920_s1, 2560  ;;  %p578_p2 = scmp.lt.u32.totalorder %s809_s20, %s920_s1 }
  0x34   : > { %p574_p6 = pneg %p937_p12  ;;  %p579_p3 = scmp.lt.u32.totalorder %s577_s23, %s572_s22 }
  0x35   : > { %p581_p4 = scmp.lt.u32.totalorder %s572_s22, %s809_s20 }
  0x36   : > { %p575_p13 = pnand %p574_p6, %p573_p11  ;;  %p580_p8 = por %p579_p3, %p578_p2 }
  0x38   : > { %p576_p1 = pneg %p575_p13  ;;  %p582_p9 = por %p581_p4, %p580_p8 }
  0x3a   : > { %p583_p10 = pnand %p582_p9, %p576_p1 }
  0x3c   : > { %586 = shalt.err (!%p583_p10)
}
  0x3d   : > { %s587_s7 = scalar_lea.vmem %s811_s12, 1280  ;;  %s675_s10 = smov [#allocation5]  }
  0x3e   : > { %p588_p5 = scmp.ne.s32.totalorder %s811_s12, %s587_s7  ;;  %s592_s11 = sshll.u32 %s675_s10, 4  ;;  %s593_s11 = int_to_ptr.vmem [resolvable:$false] %s592_s11 }
  0x3f   : > { %s594_s13 = scalar_lea.vmem %s593_s11, 2560  ;;  %p595_p11 = scmp.lt.s32.totalorder %s811_s12, %s593_s11 }
  0x40   : > { %p590_p0 = pnand %p588_p5, %p574_p6  ;;  %p596_p13 = scmp.lt.s32.totalorder %s594_s13, %s587_s7 }
  0x42   : > { %p591_p7 = pneg %p590_p0  ;;  %p597_p2 = por %p596_p13, %p595_p11 }
  0x44   : > { %p598_p3 = pnand %p597_p2, %p591_p7 }
  0x46   : > { %601 = shalt.err (!%p598_p3)
}
  0x47   : > { %s676_s14 = smov 512   ;;  %s677_s22 = smov 256  }
  0x48   : > { %s678_s5 = smov 16   ;;  %p938_p6 = scmp.ne.s32.totalorder %s933_s29, 0 }
  0x49   : > { %497 = dma.hbm_to_vmem [thread:$0]  (!%p937_p12), %s809_s20, 1280, %s811_s12, %s813_s6, %s676_s14, %s677_s22, %s678_s5  }
  0x4a   : > { %189 = sbr.rel (%p938_p6) target bundleno = 464 (0x1d0), region = 28  ;;  %p939_p1 = scmp.eq.s32.totalorder (!%p938_p6), %s728_s19, 0 }
  0x51   : > { %647 = dma.done.wait (%p939_p1), [#allocation3], 128   ;;  %p940_p8 = pmov %p939_p1 }
  0x52   : > { %s848_s9 = sand.u32 1, %s664_s16   ;;  %p941_p4 = scmp.ne.s32.totalorder %s930_s26, 0 }
  0x53   : > { %649 = vsyncadd (%p940_p8), [#allocation3], 4294967168  ;;  %s481_s23 = smul.u32 80, %s848_s9  ;;  %s196_s25 = scalar_lea.sflag [#allocation6], %s848_s9 }
  0x55   : > { %s199_s30 = scalar_lea.vmem [#allocation5], %s481_s23 }
  0x56   : > { %651 = dma.done.wait (%p941_p4), %s196_s25, 1280  }
  0x57   : > { %653 = vsyncadd (%p941_p4), %s196_s25, 4294966016  ;;  %s460_s29 = sshll.u32 %s848_s9, 4  ;;  %v679_v0 = vmov 0.0   ;;  %v228_v1 = vld [vmem:[%s199_s30 + $0x8] sm:$0xff]  ;;  %v230_v2 = vld [vmem:[%s199_s30 + $0x18] sm:$0xff]  ;;  %vm241_vm0 = vcmask 1043456  }
  0x58   : > { %312 = vmatprep.mubr.f32.mxu0 %v679_v0  ;;  %v227_v3 = vld [vmem:[%s199_s30] sm:$0xff]  ;;  %v472_v4 = vpack.c.bf16 %v230_v2, %v228_v1  ;;  %v229_v5 = vld [vmem:[%s199_s30 + $0x10] sm:$0xff]  ;;  %v232_v6 = vld [vmem:[%s199_s30 + $0x28] sm:$0xff]  ;;  %vm237_vm1 = vcmask 293888   ;;  %s219_s26 = scalar_lea.vmem [#allocation7], %s460_s29  ;;  %p942_p12 = scmp.ne.s32.totalorder %s728_s19, 0 }
  0x59   : > { %v234_v7 = vld [vmem:[%s199_s30 + $0x38] sm:$0xff]  ;;  %v474_v8 = vpack.c.bf16 %v229_v5, %v227_v3  ;;  %v231_v10 = vld [vmem:[%s199_s30 + $0x20] sm:$0xff]  ;;  %v233_v11 = vld [vmem:[%s199_s30 + $0x30] sm:$0xff]  ;;  %vm323_vm2 = vcmask (!%p942_p12), 7168   ;;  %v680_v18 = vmov (!%p942_p12), 0.0  }
  0x5a   : > { %v476_v9 = vpack.c.bf16 %v234_v7, %v232_v6  ;;  %473 = vmatprep.subr.bf16.mxu0 %v472_v4  ;;  %v478_v12 = vpack.c.bf16 %v233_v11, %v231_v10  ;;  %v236_v13 = vld [vmem:[%s199_s30 + $0x48] sm:$0xf]  ;;  %v235_v14 = vld [vmem:[%s199_s30 + $0x40] sm:$0xf]  ;;  %324 = vst.msk [vmem:[%s922_s3] sm:$0xff] (!%p942_p12), %vm323_vm2, %v680_v18  ;;  %325 = vst.msk [vmem:[%s923_s4] sm:$0xff] (!%p942_p12), %vm323_vm2, %v680_v18 }
  0x5b   : > { %475 = vmatpush1.bf16.msra.mxu0 %v474_v8  ;;  %v226_v15 = vld [vmem:[#allocation2] sm:$0xff] }
  0x5c   : > { %477 = vmatprep.subr.bf16.mxu0 %v476_v9 }
  0x5f   : > { %479 = vmatpush1.bf16.msra.mxu0 %v478_v12 }
  0x60   : > { %461 = vmatprep.subr.msk.mxu0 %vm241_vm0, %v236_v13 }
  0x63   : > { %462 = vmatpush1.msk.msra.mxu0 %vm241_vm0, %v235_v14 }
  0x64   : > { %463 = vmatmul.mubr.msk.f32.vlgmr.msra.gmra.mrb[0].mxu0 %vm237_vm1, %v226_v15 }
 0x132   : > { %322 = sbr.rel (%p942_p12) target bundleno = 313 (0x139), region = 40 }
 0x137   : > { %v314_v16 = vpop.f32.mrb[0].mxu0 }
 0x138   : > { %v316_v17 = vpop.f32.mrb[1].mxu0 }
 0x139 PF: > { %v327_v19 = vadd.f32 %v316_v17, %v314_v16  ;;  %v334_v20 = vmul.f32 %v314_v16, %v314_v16  ;;  %v335_v21 = vmul.f32 %v316_v17, %v316_v17  ;;  %341 = vst [vmem:[%s219_s26] sm:$0xff] %v314_v16  ;;  %342 = vst [vmem:[%s219_s26 + $0x8] sm:$0xff] %v316_v17  ;;  %s471_s7 = sshll.u32 %s728_s19, 8  ;;  %s358_s10 = sshll.u32 %s219_s26, 4  ;;  %s359_s10 = int_to_ptr.vmem [resolvable:$true] %s358_s10 }
 0x13a   : > { %s869_s14 = scalar_lea.hbm %s921_s2, %s471_s7  ;;  %s344_s22 = scalar_lea.sflag [#allocation4], %s848_s9 }
 0x13b   : > { %328 = vadd.xlane.f32.xlu0 %v327_v19  ;;  %v336_v22 = vadd.f32 %v335_v21, %v334_v20  ;;  %s602_s5 = scalar_lea.vmem %s359_s10, 256  ;;  %p943_p10 = scmp.ne.s32.totalorder %s931_s27, 0 }
 0x13c   : > { %p603_p9 = scmp.ne.s32.totalorder %s359_s10, %s602_s5  ;;  %s681_s23 = smov [#allocation7]  }
 0x13d   : > { %s606_s25 = sshll.u32 %s681_s23, 4  ;;  %s607_s25 = int_to_ptr.vmem [resolvable:$false] %s606_s25 }
 0x13e   : > { %p604_p5 = pnand %p603_p9, %p943_p10  ;;  %s608_s30 = scalar_lea.vmem %s607_s25, 512 }
 0x13f   : > { %337 = vadd.xlane.f32.xlu0 %v336_v22  ;;  %p609_p7 = scmp.lt.s32.totalorder %s359_s10, %s607_s25  ;;  %p610_p11 = scmp.lt.s32.totalorder %s608_s30, %s602_s5 }
 0x140   : > { %p605_p0 = pneg %p604_p5 }
 0x141   : > { %p611_p13 = por %p610_p11, %p609_p7 }
 0x143   : > { %p612_p2 = pnand %p611_p13, %p605_p0 }
 0x145   : > { %615 = shalt.err (!%p612_p2)
}
 0x146   : > { %s616_s19 = scalar_lea.hbm %s869_s14, 256  ;;  %s620_s26 = scalar_lea.hbm %s921_s2, 512 }
 0x147   : > { %p617_p3 = scmp.ne.s32.totalorder %s869_s14, %s616_s19  ;;  %p621_p8 = scmp.lt.u32.totalorder %s869_s14, %s921_s2 }
 0x148   : > { %p622_p4 = scmp.lt.u32.totalorder %s620_s26, %s616_s19  ;;  %p624_p9 = scmp.lt.u32.totalorder %s616_s19, %s869_s14 }
 0x149   : > { %p618_p6 = pnand %p617_p3, %p943_p10 }
 0x14a   : > { %p623_p12 = por %p622_p4, %p621_p8 }
 0x14b   : > { %p619_p1 = pneg %p618_p6 }
 0x14c   : > { %p625_p5 = por %p624_p9, %p623_p12 }
 0x14e   : > { %p626_p0 = pnand %p625_p5, %p619_p1 }
 0x150   : > { %629 = shalt.err (!%p626_p0)
}
 0x151   : > { %488 = dma.vmem_to_hbm [thread:$0]  (%p943_p10), %s359_s10, 256, %s869_s14, %s344_s22   ;;  %v326_v23 = vld [vmem:[%s922_s3] sm:$0xff]  ;;  %vm331_vm3 = vcmask 7168  }
 0x152   : > { %v333_v26 = vld [vmem:[%s923_s4] sm:$0xff] }
 0x1c8   : > { %v329_v24 = vpop.xlane.xlu0 %328 }
 0x1c9   : > { %v330_v25 = vadd.f32 %v329_v24, %v326_v23 }
 0x1cb   : > { %332 = vst.msk [vmem:[%s922_s3] sm:$0xff] %vm331_vm3, %v330_v25 }
 0x1cc   : > { %v338_v27 = vpop.xlane.xlu0 %337 }
 0x1cd   : > { %v339_v28 = vadd.f32 %v338_v27, %v333_v26 }
 0x1cf   : > { %340 = vst.msk [vmem:[%s923_s4] sm:$0xff] %vm331_vm3, %v339_v28 }
 0x1d0 PF: > { %s382_s10 = sand.u32 1, %s660_s15   ;;  %p944_p10 = scmp.ne.s32.totalorder %s932_s28, 0 }
 0x1d1   : > { %p945_p7 = scmp.ge.s32.totalorder %s672_s18, 2  ;;  %s383_s14 = scalar_lea.sflag [#allocation4], %s382_s10 }
 0x1d3   : > { %p499_p11 = pnand %p945_p7, %p944_p10 }
 0x1d5   : > { %655 = dma.done.wait (!%p499_p11), %s383_s14, 256  }
 0x1d6   : > { %657 = vsyncadd (!%p499_p11), %s383_s14, 4294967040  ;;  %p19_p13 = scmp.ge.s32.totalorder %s732_s21, 4   ;;  %s946_s15 = smov %s664_s16 }
 0x1d7   : > { %s947_s16 = smov %s668_s17  ;;  %s948_s17 = smov %s744_s24 }
 0x1d8   : > { %s949_s18 = smov %s732_s21  ;;  %21 = sbr.rel (!%p19_p13) target bundleno = 6 (0x6), region = 98 }
 0x1df   :  { %388 = vsyncpa [#allocation3], 1 }
 0x1e0   :  { %390 = vsyncpa [#allocation3 + $0x1], 1 }
 0x1e1   :  { %391 = vsyncpa [#allocation6], 1 }
 0x1e2   :  { %393 = vsyncpa [#allocation6 + $0x1], 1 }
 0x1e3   :  { %394 = vsyncpa [#allocation4], 1 }
 0x1e4   :  { %396 = vsyncpa [#allocation4 + $0x1], 1 }

</bundles_post_ra>
